<compile_context>
chip_gen: v7x
topology: tpu7x:2x2x1
jax: 0.10.0
libtpu: 0.0.40
codegen_flags: <defaults>
</compile_context>

<pallas_src>
import jax
import jax.numpy as jnp
from jax.experimental import pallas as pl
from jax.experimental.pallas import tpu as pltpu


def _dma_identity_kernel(src_hbm, dst_hbm, sem):
    # Pure DMA-engine copy: HBM -> HBM, no VMEM round trip, no vector slots.
    cp = pltpu.make_async_copy(src_hbm, dst_hbm, sem)
    cp.start()
    cp.wait()


def direct_regressor_forward(feat: jax.Array, batch_output_value: jax.Array) -> jax.Array:
    """Pallas equivalent of DirectRegressor.forward(feat, batch).

    Args:
      feat: (B, N, in_dim) feature tensor. Unused (kept for signature parity
            with the PyTorch module); it is never handed to the kernel, so it
            costs zero HBM traffic.
      batch_output_value: (B, N, out_dim) tensor, i.e. batch.output[name].

    Returns:
      Tensor identical to batch_output_value.
    """
    # NOTE: the true production fast path is simply `return batch_output_value`
    # (zero work). The kernel below is the minimal-cost Pallas realization:
    # a single HBM->HBM async copy.
    del feat  # DirectRegressor ignores feat.

    return pl.pallas_call(
        _dma_identity_kernel,
        out_shape=jax.ShapeDtypeStruct(
            batch_output_value.shape, batch_output_value.dtype
        ),
        in_specs=[pl.BlockSpec(memory_space=pl.ANY)],   # raw HBM ref, no auto-DMA
        out_specs=pl.BlockSpec(memory_space=pl.ANY),    # raw HBM ref, no auto-DMA
        scratch_shapes=[pltpu.SemaphoreType.DMA(())],
    )(batch_output_value)


if __name__ == "__main__":
    # DirectRegressor(in_dim=4, name='density'): out_dim == in_dim == 4.
    # No learnable parameters exist in this module (nothing to initialize).
    B, N, in_dim = 2, 8, 4

    key = jax.random.PRNGKey(0)
    k_feat, k_density = jax.random.split(key)

    feat = jax.random.normal(k_feat, (B, N, in_dim), dtype=jnp.float32)
    # batch.output['density'] — the precomputed value the module passes through.
    density = jax.random.normal(k_density, (B, N, in_dim), dtype=jnp.float32)

    out = direct_regressor_forward(feat, density)
    out = jax.block_until_ready(out)

    assert out.shape == density.shape
    assert out.dtype == density.dtype
    assert bool(jnp.all(out == density))

    print("KERNEL_OK")
</pallas_src>

<mosaic_0001>
module attributes {stable_mosaic.version = 11 : i64} {
  func.func @_dma_identity_kernel(%arg0: memref<2x8x4xf32, #tpu.memory_space<any>>, %arg1: memref<2x8x4xf32, #tpu.memory_space<any>>, %arg2: memref<!tpu.dma_semaphore, #tpu.memory_space<semaphore_mem>>) attributes {dimension_semantics = [], scalar_prefetch = 0 : i64, scratch_operands = 1 : i64, tpu.core_type = #tpu.core_type<tc>} {
    tpu.enqueue_dma source(%arg0 : memref<2x8x4xf32, #tpu.memory_space<any>>) target(%arg1 : memref<2x8x4xf32, #tpu.memory_space<any>>) target_semaphore(%arg2 : memref<!tpu.dma_semaphore, #tpu.memory_space<semaphore_mem>>)
    tpu.wait_dma2 semaphore(%arg2 : memref<!tpu.dma_semaphore, #tpu.memory_space<semaphore_mem>>) src(%arg0 : memref<2x8x4xf32, #tpu.memory_space<any>>) dst(%arg1 : memref<2x8x4xf32, #tpu.memory_space<any>>)
    return
  }
}

</mosaic_0001>

<bundles_post_ra>
// kernel: tpu_custom_call.1
= control target key start
LH: loop header
LB: loop body
LE: loop exit
PB: predicated region body
PF: predicated region fallthrough
CT: control target
= control target key end

     0   :  { %s93_s0 = inlined_call_operand.vmem [shape: f32[2,8,4], index: 0, kind: input, shape index: {}]   ;;  %s94_s1 = inlined_call_operand.vmem [shape: f32[2,8,4], index: 1, kind: output, shape index: {}]  }
   0x1   :  { %v38_v0 = vld [vmem:[%s93_s0] sm:$0xff]  ;;  %v40_v1 = vld [vmem:[%s93_s0 + $0x8] sm:$0xff] }
   0x2   :  { %39 = vst [vmem:[%s94_s1] sm:$0xff] %v38_v0  ;;  %41 = vst [vmem:[%s94_s1 + $0x8] sm:$0xff] %v40_v1 }
   0x3   :  { %49 = vsyncadd [#allocation2], 256 }
   0x4   :  { %69 = dma.done.wait [#allocation2], 256 }
   0x5   :  { %70 = vsyncadd [#allocation2], 4294967040 }
   0x6   :  { %54 = vsyncmov [#allocation2] }
   0x9   :  { %s55_s14 = vpop.sfrf %54 }
   0xa   :  { %p68_p0 = scmp.ne.s32.totalorder %s55_s14, 0 }
   0xc   :  { %59 = shalt.err (%p68_p0)  }

</bundles_post_ra>
